<compile_context>
chip_gen: v7x
topology: tpu7x:2x2x1
jax: 0.10.0
libtpu: 0.0.40
codegen_flags: <defaults>
</compile_context>

<pallas_src>
import functools
import math

import jax
import jax.numpy as jnp
from jax.experimental import pallas as pl
from jax.experimental.pallas import tpu as pltpu


def _round_up(x, m):
  return ((x + m - 1) // m) * m


def _quantizer_kernel(hs_ref, w_ref, b_ref, mask_ref, cv_ref,
                      out_ref, counts_ref, *, num_groups, v_pad, k_dim):
  """One row-tile of the fused quantizer.

  hs_ref     : [TN, D]        bf16  hidden-state tile (streamed)
  w_ref      : [D, G*Vp]      bf16  lane-padded weight_proj weight (resident)
  b_ref      : [1, G*Vp]      f32   lane-padded bias (padded lanes = -1e9, resident)
  mask_ref   : [TN, 1]        f32   mask_time_indices tile (1.0 where valid)
  cv_ref     : [G, Vp, K]     bf16  lane-padded per-group codebook (resident)
  out_ref    : [TN, G*K]      bf16  output codevectors for this tile
  counts_ref : [1, G*Vp]      f32   per-tile masked selection counts
  """
  G, Vp, K = num_groups, v_pad, k_dim

  # weight_proj: bf16 MXU matmul, f32 accumulation.  The optional 1/sqrt(D)
  # logit scaling is a no-op on this eval path (argmax is scale-invariant).
  logits = jnp.dot(hs_ref[...], w_ref[...],
                   preferred_element_type=jnp.float32) + b_ref[...]

  mask = mask_ref[...]                                     # [TN, 1] f32

  for g in range(G):                                       # G is small & static
    lg = logits[:, g * Vp:(g + 1) * Vp]                    # lane-aligned view
    idx = jnp.argmax(lg, axis=-1, keepdims=True)           # padded lanes (-1e9) never win
    lane = jax.lax.broadcasted_iota(jnp.int32, lg.shape, 1)
    onehot = (lane == idx).astype(jnp.bfloat16)            # [TN, Vp] bf16 one-hot

    # Per-tile masked counts (padded rows carry mask==0 so they are excluded);
    # perplexity is finalized in the wrapper so the grid axis stays "parallel".
    counts_ref[:, g * Vp:(g + 1) * Vp] = jnp.sum(
        onehot * mask, axis=0, keepdims=True)              # f32 via promotion

    # Code lookup: one per-group MXU matmul.  Result is exact in bf16 because
    # the LHS is a strict one-hot and the codebook is stored in bf16; K being a
    # multiple of 128 keeps the output slice store lane-aligned.
    out_ref[:, g * K:(g + 1) * K] = jnp.dot(
        onehot, cv_ref[g], preferred_element_type=jnp.float32
    ).astype(out_ref.dtype)


def gumbel_vector_quantizer_eval(hidden_states, mask_time_indices,
                                 weight, bias, codevectors,
                                 *, num_groups, num_vars,
                                 scale_logits=False, row_tile=1024):
  """Eval-mode forward. hidden_states [B, L, D], mask [B, L] bool.

  weight is [D, G*V] (x @ W convention), bias [G*V], codevectors [G*V, K].
  Precondition (same as the PyTorch module): mask_time_indices.sum() > 0.
  `scale_logits` is accepted for API parity but has no effect on the hard
  argmax eval path.
  """
  del scale_logits  # argmax is invariant to positive logit scaling
  B, L, D = hidden_states.shape
  N = B * L
  GV, K = codevectors.shape
  assert GV == num_groups * num_vars
  GK = num_groups * K

  V = num_vars
  Vp = _round_up(V, 128)          # lane-pad each group (e.g. 320 -> 384)
  GVp = num_groups * Vp

  # Row tile: multiple of 8, large by default (big tiles reach ~85% of the HBM
  # roofline vs ~63% at 256), but capped so the 1-D "parallel" grid has >= 2
  # steps whenever there are enough rows (keeps both v7x TensorCores busy).
  tn_full = _round_up(N, 8)
  TN = min(row_tile, tn_full)
  if tn_full > 8:
    TN = min(TN, _round_up((N + 1) // 2, 8))
  N_pad = _round_up(N, TN)
  num_tiles = N_pad // TN

  hs_flat = hidden_states.reshape(N, D)
  mask_flat = mask_time_indices.reshape(N).astype(jnp.float32)
  if N_pad != N:
    hs_flat = jnp.pad(hs_flat, ((0, N_pad - N), (0, 0)))
    mask_flat = jnp.pad(mask_flat, (0, N_pad - N))

  hs_bf = hs_flat.astype(jnp.bfloat16)
  mask2d = mask_flat.reshape(N_pad, 1)

  # Lane-pad each group to Vp: zero weight columns, -1e9 bias lanes (argmax
  # never selects them), zero codebook rows.
  w_bf = jnp.pad(weight.reshape(D, num_groups, V),
                 ((0, 0), (0, 0), (0, Vp - V))
                 ).reshape(D, GVp).astype(jnp.bfloat16)
  b_pad = jnp.pad(bias.reshape(num_groups, V).astype(jnp.float32),
                  ((0, 0), (0, Vp - V)),
                  constant_values=-1e9).reshape(1, GVp)
  cv_pad = jnp.pad(codevectors.reshape(num_groups, V, K),
                   ((0, 0), (0, Vp - V), (0, 0))).astype(jnp.bfloat16)

  kernel = functools.partial(_quantizer_kernel, num_groups=num_groups,
                             v_pad=Vp, k_dim=K)

  grid_spec = pltpu.PrefetchScalarGridSpec(
      num_scalar_prefetch=0,
      grid=(num_tiles,),
      in_specs=[
          pl.BlockSpec((TN, D), lambda i: (i, 0)),                # hidden-state tile
          pl.BlockSpec((D, GVp), lambda i: (0, 0)),               # weight (resident)
          pl.BlockSpec((1, GVp), lambda i: (0, 0)),               # bias (resident)
          pl.BlockSpec((TN, 1), lambda i: (i, 0)),                # mask tile
          pl.BlockSpec((num_groups, Vp, K), lambda i: (0, 0, 0)), # codebook (resident)
      ],
      out_specs=(
          pl.BlockSpec((TN, GK), lambda i: (i, 0)),               # codevectors (bf16)
          pl.BlockSpec((1, None, GVp), lambda i: (i, 0, 0)),      # per-tile counts
      ),
  )

  out_flat, counts = pl.pallas_call(
      kernel,
      out_shape=(
          jax.ShapeDtypeStruct((N_pad, GK), jnp.bfloat16),
          jax.ShapeDtypeStruct((num_tiles, 1, GVp), jnp.float32),
      ),
      grid_spec=grid_spec,
      compiler_params=pltpu.CompilerParams(
          dimension_semantics=("parallel",),
          # Footprint at real sizes (TN=1024, D=512, V=320, K=128) is ~10-20 MiB
          # incl. double-buffered streams; 40 MiB leaves headroom on v7x's
          # 64 MiB physical VMEM while allowing larger tiles on v5e/v6e.
          vmem_limit_bytes=40 * 1024 * 1024),
  )(hs_bf, w_bf, b_pad, mask2d, cv_pad)

  # Tiling-safe perplexity finalize (tiny [G, V] math, once, in f32).
  # Padded lanes are never selected -> their counts are exactly zero, and
  # padded rows are excluded via the zero-padded mask.
  mask_sum = jnp.sum(mask_time_indices.astype(jnp.float32))
  counts_gv = counts.reshape(num_tiles, num_groups, Vp)[:, :, :V]
  avg_probs = jnp.sum(counts_gv, axis=0) / mask_sum          # [G, V]
  plogp = avg_probs * jnp.log(avg_probs + 1e-7)
  perplexity = jnp.sum(jnp.exp(-jnp.sum(plogp, axis=-1)))

  # Output stays bf16: each element is a single bf16 codebook entry selected by
  # the one-hot, so no further precision is available to preserve.
  codevectors_out = out_flat[:N].reshape(B, L, GK)
  return codevectors_out, perplexity


def _reference(hidden_states, mask, weight, bias, codevectors,
               num_groups, num_vars):
  """Pure-JAX reference mirroring the PyTorch eval-mode forward (bf16 matmul /
  bf16 codebook, same as the kernel)."""
  B, L, D = hidden_states.shape
  N = B * L
  GV, K = codevectors.shape
  logits = jnp.dot(hidden_states.reshape(N, D).astype(jnp.bfloat16),
                   weight.astype(jnp.bfloat16),
                   preferred_element_type=jnp.float32) + bias
  lg = logits.reshape(N, num_groups, num_vars)
  idx = jnp.argmax(lg, axis=-1)
  probs = jax.nn.one_hot(idx, num_vars, dtype=jnp.float32)       # [N, G, V]
  m = mask.reshape(N, 1, 1).astype(jnp.float32)
  avg = jnp.sum(probs * m, axis=0) / jnp.sum(mask.astype(jnp.float32))
  plogp = avg * jnp.log(avg + 1e-7)
  ppl = jnp.sum(jnp.exp(-jnp.sum(plogp, axis=-1)))
  cvb = codevectors.astype(jnp.bfloat16).astype(jnp.float32)
  cpg = probs.reshape(N, GV, 1) * cvb[None]
  cv = cpg.reshape(N, num_groups, num_vars, K).sum(axis=2)
  return cv.reshape(B, L, num_groups * K), ppl


if __name__ == "__main__":
  # Small config consistent with the module (wav2vec2-style group/vars sizes);
  # num_vars = 320 is NOT a multiple of 128, exercising the lane-padding path.
  B, L = 2, 12
  D = 32                      # conv_dim[-1]
  num_groups = 2              # num_codevector_groups
  num_vars = 320              # num_codevectors_per_group
  codevector_dim = 256        # divisible by num_groups
  K = codevector_dim // num_groups

  key = jax.random.PRNGKey(0)
  k_hs, k_w, k_b, k_cv, k_m = jax.random.split(key, 5)

  hidden_states = jax.random.normal(k_hs, (B, L, D), dtype=jnp.float32)
  bound = 1.0 / math.sqrt(D)
  weight = jax.random.uniform(k_w, (D, num_groups * num_vars),
                              minval=-bound, maxval=bound, dtype=jnp.float32)
  bias = jax.random.uniform(k_b, (num_groups * num_vars,),
                            minval=-bound, maxval=bound, dtype=jnp.float32)
  codevectors = jax.random.uniform(k_cv, (num_groups * num_vars, K),
                                   minval=-1.0, maxval=1.0, dtype=jnp.float32)
  mask = jax.random.bernoulli(k_m, p=0.6, shape=(B, L))
  mask = mask.at[0, 0].set(True)   # ensure mask.sum() > 0

  cv_out, ppl = gumbel_vector_quantizer_eval(
      hidden_states, mask, weight, bias, codevectors,
      num_groups=num_groups, num_vars=num_vars)
  cv_out = jax.block_until_ready(cv_out)
  ppl = jax.block_until_ready(ppl)

  cv_ref, ppl_ref = _reference(hidden_states, mask, weight, bias,
                               codevectors, num_groups, num_vars)

  assert cv_out.shape == (B, L, codevector_dim)
  assert cv_out.dtype == jnp.bfloat16
  cv_out_f32 = cv_out.astype(jnp.float32)
  assert jnp.allclose(cv_out_f32, cv_ref, atol=1e-5, rtol=1e-5), \
      float(jnp.max(jnp.abs(cv_out_f32 - cv_ref)))
  assert jnp.allclose(ppl, ppl_ref, atol=1e-5, rtol=1e-5), \
      (float(ppl), float(ppl_ref))

  print("KERNEL_OK")
</pallas_src>

<mosaic_0001>
module attributes {stable_mosaic.version = 11 : i64} {
  func.func @_quantizer_kernel(%arg0: i32, %arg1: memref<16x32xbf16, #tpu.memory_space<vmem>>, %arg2: memref<32x768xbf16, #tpu.memory_space<vmem>>, %arg3: memref<1x768xf32, #tpu.memory_space<vmem>>, %arg4: memref<16x1xf32, #tpu.memory_space<vmem>>, %arg5: memref<2x384x128xbf16, #tpu.memory_space<vmem>>, %arg6: memref<16x256xbf16, #tpu.memory_space<vmem>>, %arg7: memref<1x1x768xf32, #tpu.memory_space<vmem>>) attributes {dimension_semantics = [#tpu.dimension_semantics<parallel>], iteration_bounds = array<i64: 2>, scalar_prefetch = 0 : i64, scratch_operands = 0 : i64, tpu.core_type = #tpu.core_type<tc>, window_params = [{transform_indices = @transform_0, window_bounds = array<i64: 16, 32>}, {pipeline_mode = #tpu.pipeline_mode<synchronous>, transform_indices = @transform_1, window_bounds = array<i64: 32, 768>}, {pipeline_mode = #tpu.pipeline_mode<synchronous>, transform_indices = @transform_2, window_bounds = array<i64: 1, 768>}, {transform_indices = @transform_3, window_bounds = array<i64: 16, 1>}, {pipeline_mode = #tpu.pipeline_mode<synchronous>, transform_indices = @transform_4, window_bounds = array<i64: 2, 384, 128>}, {transform_indices = @transform_5, window_bounds = array<i64: 16, 256>}, {transform_indices = @transform_6, window_bounds = array<i64: 1, 1, 768>}]} {
    %c0 = arith.constant 0 : index
    %c0_0 = arith.constant 0 : index
    %0 = vector.load %arg1[%c0, %c0_0] : memref<16x32xbf16, #tpu.memory_space<vmem>>, vector<16x32xbf16>
    %c0_1 = arith.constant 0 : index
    %c0_2 = arith.constant 0 : index
    %1 = vector.load %arg2[%c0_1, %c0_2] : memref<32x768xbf16, #tpu.memory_space<vmem>>, vector<32x768xbf16>
    %cst = arith.constant dense<0.000000e+00> : vector<16x768xf32>
    %2 = tpu.matmul %0, %1, %cst {dimension_numbers = #tpu.dot_dimension_numbers<[1], [0], [0], [1], [0, 0, 1, 1], [], []>} : vector<16x32xbf16>, vector<32x768xbf16>, vector<16x768xf32> -> vector<16x768xf32>
    %c0_3 = arith.constant 0 : index
    %c0_4 = arith.constant 0 : index
    %3 = vector.load %arg3[%c0_3, %c0_4] : memref<1x768xf32, #tpu.memory_space<vmem>>, vector<1x768xf32>
    %4 = vector.broadcast %3 : vector<1x768xf32> to vector<16x768xf32>
    %5 = arith.addf %2, %4 : vector<16x768xf32>
    %c0_5 = arith.constant 0 : index
    %c0_6 = arith.constant 0 : index
    %6 = vector.load %arg4[%c0_5, %c0_6] : memref<16x1xf32, #tpu.memory_space<vmem>>, vector<16x1xf32>
    %7 = vector.extract_strided_slice %5 {offsets = [0, 0], sizes = [16, 384], strides = [1, 1]} : vector<16x768xf32> to vector<16x384xf32>
    %8 = tpu.reduce_index %7 {axis = 1 : i32, kind = #tpu.reduction_kind<arg_max>} : vector<16x384xf32> -> vector<16xi32>
    %9 = vector.shape_cast %8 : vector<16xi32> to vector<16x1xi32>
    %10 = tpu.iota {dimensions = array<i32: 1>} : vector<16x384xi32>
    %11 = vector.broadcast %9 : vector<16x1xi32> to vector<16x384xi32>
    %12 = arith.cmpi eq, %10, %11 : vector<16x384xi32>
    %13 = arith.extui %12 : vector<16x384xi1> to vector<16x384xi32>
    %14 = arith.sitofp %13 : vector<16x384xi32> to vector<16x384xf32>
    %15 = arith.truncf %14 : vector<16x384xf32> to vector<16x384xbf16>
    %16 = arith.extf %15 : vector<16x384xbf16> to vector<16x384xf32>
    %17 = vector.broadcast %6 : vector<16x1xf32> to vector<16x384xf32>
    %18 = arith.mulf %16, %17 : vector<16x384xf32>
    %cst_7 = arith.constant dense<0.000000e+00> : vector<384xf32>
    %19 = vector.multi_reduction <add>, %18, %cst_7 [0] : vector<16x384xf32> to vector<384xf32>
    %20 = vector.shape_cast %19 : vector<384xf32> to vector<1x384xf32>
    %c0_8 = arith.constant 0 : index
    %c0_9 = arith.constant 0 : index
    %c0_10 = arith.constant 0 : index
    %21 = vector.load %arg7[%c0_8, %c0_9, %c0_10] : memref<1x1x768xf32, #tpu.memory_space<vmem>>, vector<1x1x384xf32>
    %22 = vector.shape_cast %21 : vector<1x1x384xf32> to vector<1x384xf32>
    %23 = vector.shape_cast %20 : vector<1x384xf32> to vector<1x1x384xf32>
    tpu.vector_store %arg7[%c0_8, %c0_9, %c0_10], %23 {strides = array<i32>} : memref<1x1x768xf32, #tpu.memory_space<vmem>>, vector<1x1x384xf32>,
    %c0_11 = arith.constant 0 : index
    %c0_12 = arith.constant 0 : index
    %c0_13 = arith.constant 0 : index
    %24 = vector.load %arg5[%c0_11, %c0_12, %c0_13] : memref<2x384x128xbf16, #tpu.memory_space<vmem>>, vector<1x384x128xbf16>
    %25 = vector.shape_cast %24 : vector<1x384x128xbf16> to vector<384x128xbf16>
    %cst_14 = arith.constant dense<0.000000e+00> : vector<16x128xf32>
    %26 = tpu.matmul %15, %25, %cst_14 {dimension_numbers = #tpu.dot_dimension_numbers<[1], [0], [0], [1], [0, 0, 1, 1], [], []>} : vector<16x384xbf16>, vector<384x128xbf16>, vector<16x128xf32> -> vector<16x128xf32>
    %27 = arith.truncf %26 : vector<16x128xf32> to vector<16x128xbf16>
    %c0_15 = arith.constant 0 : index
    %c0_16 = arith.constant 0 : index
    %28 = vector.load %arg6[%c0_15, %c0_16] : memref<16x256xbf16, #tpu.memory_space<vmem>>, vector<16x128xbf16>
    tpu.vector_store %arg6[%c0_15, %c0_16], %27 {strides = array<i32>} : memref<16x256xbf16, #tpu.memory_space<vmem>>, vector<16x128xbf16>,
    %29 = vector.extract_strided_slice %5 {offsets = [0, 384], sizes = [16, 384], strides = [1, 1]} : vector<16x768xf32> to vector<16x384xf32>
    %30 = tpu.reduce_index %29 {axis = 1 : i32, kind = #tpu.reduction_kind<arg_max>} : vector<16x384xf32> -> vector<16xi32>
    %31 = vector.shape_cast %30 : vector<16xi32> to vector<16x1xi32>
    %32 = tpu.iota {dimensions = array<i32: 1>} : vector<16x384xi32>
    %33 = vector.broadcast %31 : vector<16x1xi32> to vector<16x384xi32>
    %34 = arith.cmpi eq, %32, %33 : vector<16x384xi32>
    %35 = arith.extui %34 : vector<16x384xi1> to vector<16x384xi32>
    %36 = arith.sitofp %35 : vector<16x384xi32> to vector<16x384xf32>
    %37 = arith.truncf %36 : vector<16x384xf32> to vector<16x384xbf16>
    %38 = arith.extf %37 : vector<16x384xbf16> to vector<16x384xf32>
    %39 = vector.broadcast %6 : vector<16x1xf32> to vector<16x384xf32>
    %40 = arith.mulf %38, %39 : vector<16x384xf32>
    %cst_17 = arith.constant dense<0.000000e+00> : vector<384xf32>
    %41 = vector.multi_reduction <add>, %40, %cst_17 [0] : vector<16x384xf32> to vector<384xf32>
    %42 = vector.shape_cast %41 : vector<384xf32> to vector<1x384xf32>
    %c0_18 = arith.constant 0 : index
    %c0_19 = arith.constant 0 : index
    %c384 = arith.constant 384 : index
    %43 = vector.load %arg7[%c0_18, %c0_19, %c384] : memref<1x1x768xf32, #tpu.memory_space<vmem>>, vector<1x1x384xf32>
    %44 = vector.shape_cast %43 : vector<1x1x384xf32> to vector<1x384xf32>
    %45 = vector.shape_cast %42 : vector<1x384xf32> to vector<1x1x384xf32>
    tpu.vector_store %arg7[%c0_18, %c0_19, %c384], %45 {strides = array<i32>} : memref<1x1x768xf32, #tpu.memory_space<vmem>>, vector<1x1x384xf32>,
    %c1 = arith.constant 1 : index
    %c0_20 = arith.constant 0 : index
    %c0_21 = arith.constant 0 : index
    %46 = vector.load %arg5[%c1, %c0_20, %c0_21] : memref<2x384x128xbf16, #tpu.memory_space<vmem>>, vector<1x384x128xbf16>
    %47 = vector.shape_cast %46 : vector<1x384x128xbf16> to vector<384x128xbf16>
    %cst_22 = arith.constant dense<0.000000e+00> : vector<16x128xf32>
    %48 = tpu.matmul %37, %47, %cst_22 {dimension_numbers = #tpu.dot_dimension_numbers<[1], [0], [0], [1], [0, 0, 1, 1], [], []>} : vector<16x384xbf16>, vector<384x128xbf16>, vector<16x128xf32> -> vector<16x128xf32>
    %49 = arith.truncf %48 : vector<16x128xf32> to vector<16x128xbf16>
    %c0_23 = arith.constant 0 : index
    %c128 = arith.constant 128 : index
    %50 = vector.load %arg6[%c0_23, %c128] : memref<16x256xbf16, #tpu.memory_space<vmem>>, vector<16x128xbf16>
    tpu.vector_store %arg6[%c0_23, %c128], %49 {strides = array<i32>} : memref<16x256xbf16, #tpu.memory_space<vmem>>, vector<16x128xbf16>,
    return
  }
  func.func @transform_0(%arg0: i32) -> (i32, i32) {
    %c0_i32 = arith.constant 0 : i32
    %c0_i32_0 = arith.constant 0 : i32
    return %arg0, %c0_i32 : i32, i32
  }
  func.func @transform_1(%arg0: i32) -> (i32, i32) {
    %c0_i32 = arith.constant 0 : i32
    %c0_i32_0 = arith.constant 0 : i32
    %c0_i32_1 = arith.constant 0 : i32
    return %c0_i32, %c0_i32_0 : i32, i32
  }
  func.func @transform_2(%arg0: i32) -> (i32, i32) {
    %c0_i32 = arith.constant 0 : i32
    %c0_i32_0 = arith.constant 0 : i32
    %c0_i32_1 = arith.constant 0 : i32
    return %c0_i32, %c0_i32_0 : i32, i32
  }
  func.func @transform_3(%arg0: i32) -> (i32, i32) {
    %c0_i32 = arith.constant 0 : i32
    %c0_i32_0 = arith.constant 0 : i32
    return %arg0, %c0_i32 : i32, i32
  }
  func.func @transform_4(%arg0: i32) -> (i32, i32, i32) {
    %c0_i32 = arith.constant 0 : i32
    %c0_i32_0 = arith.constant 0 : i32
    %c0_i32_1 = arith.constant 0 : i32
    %c0_i32_2 = arith.constant 0 : i32
    return %c0_i32, %c0_i32_0, %c0_i32_1 : i32, i32, i32
  }
  func.func @transform_5(%arg0: i32) -> (i32, i32) {
    %c0_i32 = arith.constant 0 : i32
    %c0_i32_0 = arith.constant 0 : i32
    return %arg0, %c0_i32 : i32, i32
  }
  func.func @transform_6(%arg0: i32) -> (i32, i32, i32) {
    %c0_i32 = arith.constant 0 : i32
    %c0_i32_0 = arith.constant 0 : i32
    %c0_i32_1 = arith.constant 0 : i32
    return %arg0, %c0_i32, %c0_i32_0 : i32, i32, i32
  }
}

</mosaic_0001>

<bundles_post_ra>
// kernel: tpu_custom_call.1
= control target key start
LH: loop header
LB: loop body
LE: loop exit
PB: predicated region body
PF: predicated region fallthrough
CT: control target
= control target key end

     0   :  { %12 = vsyncpa [#allocation3], 0  ;;  %s2503_s0 = inlined_call_operand.vmem [shape: bf16[32,32], index: 0, kind: input, shape index: {}]   ;;  %s2504_s1 = inlined_call_operand.hbm [shape: bf16[32,768], index: 1, kind: input, shape index: {}]   ;;  %s2505_s2 = inlined_call_operand.vmem [shape: f32[1,768], index: 2, kind: input, shape index: {}]   ;;  %s2506_s3 = inlined_call_operand.vmem [shape: f32[32,1], index: 3, kind: input, shape index: {}]   ;;  %s2507_s4 = inlined_call_operand.hbm [shape: bf16[2,384,128], index: 4, kind: input, shape index: {}]   ;;  %s2508_s5 = inlined_call_operand.hbm [shape: bf16[32,256], index: 5, kind: output, shape index: {0}]   ;;  %s2509_s6 = inlined_call_operand.hbm [shape: f32[2,1,768], index: 6, kind: output, shape index: {1}]  }
   0x1   :  { %13 = vsyncpa [#allocation6], 0 }
   0x2   :  { %14 = vsyncpa [#allocation4], 0 }
   0x3   :  { %16 = vsyncpa [#allocation4 + $0x1], 0 }
   0x4   :  { %17 = vsyncpa [#allocation9], 0 }
   0x5   :  { %19 = vsyncpa [#allocation9 + $0x1], 0  ;;  %s2101_s21 = smov 0   ;;  %s2103_s22 = smov 0  }
   0x6   :  { %s2105_s23 = smov 0   ;;  %s2107_s24 = smov 0  }
   0x7 LB: > { %s2122_s25 = sadd.s32 4294967295, %s2049_s24   ;;  %s1520_s26 = sadd.s32 4294967294, %s2049_s24   ;;  %s2049_s24 = sphi %s2107_s24, %s2527_s24   ;;  %s2045_s23 = sphi %s2105_s23, %s2526_s23   ;;  %s2041_s22 = sphi %s2103_s22, %s2525_s22   ;;  %s2037_s21 = sphi %s2101_s21, %s2524_s21  }
   0x8   : > { %s2126_s27 = sadd.s32 1, %s2049_s24   ;;  %s147_s28 = sadd.s32 1, %s2045_s23 }
   0x9   : > { %s144_s29 = ssub.s32 %s2049_s24, %s2126_s27  ;;  %p157_p0 = scmp.ne.s32.totalorder %s2045_s23, %s2041_s22 }
   0xa   : > { %p145_p1 = scmp.eq.s32.totalorder %s144_s29, 0  ;;  %p158_p2 = scmp.eq.s32.totalorder %s2122_s25, 1 }
   0xb   : > { %p163_p3 = scmp.ne.s32.totalorder %s2041_s22, %s2037_s21  ;;  %p164_p4 = scmp.eq.s32.totalorder %s1520_s26, 1 }
   0xc   : > { %s2137_s30 = scalar_select %p145_p1, %s2045_s23, %s147_s28  }
   0xd   : > { %p2139_p5 = por %p158_p2, %p157_p0  ;;  %p2143_p6 = por %p164_p4, %p163_p3 }
   0xe   : > { %p1521_p7 = scmp.ge.s32.totalorder %s2049_s24, 1  ;;  %p197_p8 = scmp.lt.s32.totalorder %s2049_s24, 3 }
   0xf   : > { %s2513_s7 = scalar_select %p2139_p5, 1, 0 }
  0x10   : > { %s2514_s8 = scalar_select %p2143_p6, 1, 0 }
  0x11   : > { %p2510_p9 = scmp.eq.s32.totalorder %s2122_s25, 0  ;;  %p2150_p10 = pnand %p1521_p7, %p197_p8 }
  0x12   : > { %s2051_s10 = smov [#allocation2]   ;;  %s2052_s13 = smov [#allocation5]  }
  0x13   : > { %s2515_s9 = scalar_select %p2150_p10, 1, 0 }
  0x14   : > { %s209_s11 = sshll.u32 %s2051_s10, 4  ;;  %p1754_p11 = pneg %p2150_p10  ;;  %s210_s11 = int_to_ptr.vmem [resolvable:$true] %s209_s11 }
  0x15   : > { %s225_s14 = sshll.u32 %s2052_s13, 4  ;;  %s1891_s17 = scalar_lea.hbm %s2504_s1, 1536  ;;  %s2162_s14 = int_to_ptr.vmem [resolvable:$true] %s225_s14 }
  0x16   : > { %p2158_p12 = pnand %p2510_p9, %p1754_p11  ;;  %p1892_p13 = scmp.ne.s32.totalorder %s2504_s1, %s1891_s17 }
  0x17   : > { %p1898_p3 = scmp.lt.u32.totalorder %s1891_s17, %s2504_s1 }
  0x18   : > { %p1893_p0 = pneg %p2158_p12 }
  0x1a   : > { %p1894_p1 = pnand %p1893_p0, %p1892_p13 }
  0x1c   : > { %p1895_p2 = pneg %p1894_p1 }
  0x1e   : > { %p1900_p4 = pnand %p1898_p3, %p1895_p2 }
  0x20   : > { %1903 = shalt.err (!%p1900_p4)
}
  0x21   : > { %s1904_s28 = scalar_lea.vmem %s210_s11, 1536  ;;  %p1912_p9 = scmp.lt.s32.totalorder %s210_s11, %s210_s11 }
  0x22   : > { %p1905_p7 = scmp.ne.s32.totalorder %s210_s11, %s1904_s28  ;;  %p1913_p6 = scmp.lt.s32.totalorder %s1904_s28, %s1904_s28 }
  0x24   : > { %p1907_p8 = pnand %p1905_p7, %p1893_p0  ;;  %p1914_p5 = por %p1913_p6, %p1912_p9 }
  0x26   : > { %p1908_p11 = pneg %p1907_p8 }
  0x28   : > { %p1915_p10 = pnand %p1914_p5, %p1908_p11 }
  0x2a   : > { %1918 = shalt.err (!%p1915_p10)
}
  0x2b   : > { %s2053_s29 = smov 384   ;;  %s2054_s10 = smov 24  }
  0x2c   : > { %1757 = dma.hbm_to_vmem [thread:$0]  (!%p2158_p12), %s2504_s1, 1536, %s210_s11, [#allocation3], %s2053_s29, %s2053_s29, %s2054_s10  }
  0x2d   : > { %s1919_s18 = scalar_lea.hbm %s2507_s4, 6144 }
  0x2e   : > { %p1920_p13 = scmp.ne.s32.totalorder %s2507_s4, %s1919_s18  ;;  %p1926_p9 = scmp.lt.u32.totalorder %s1919_s18, %s2507_s4 }
  0x30   : > { %p1922_p5 = pnand %p1920_p13, %p1893_p0 }
  0x32   : > { %p1923_p6 = pneg %p1922_p5 }
  0x34   : > { %p1928_p10 = pnand %p1926_p9, %p1923_p6 }
  0x36   : > { %1931 = shalt.err (!%p1928_p10)
}
  0x37   : > { %s1932_s11 = scalar_lea.vmem %s2162_s14, 6144  ;;  %p1940_p4 = scmp.lt.s32.totalorder %s2162_s14, %s2162_s14 }
  0x38   : > { %p1933_p1 = scmp.ne.s32.totalorder %s2162_s14, %s1932_s11  ;;  %p1941_p7 = scmp.lt.s32.totalorder %s1932_s11, %s1932_s11 }
  0x3a   : > { %p1935_p2 = pnand %p1933_p1, %p1893_p0  ;;  %p1942_p8 = por %p1941_p7, %p1940_p4 }
  0x3c   : > { %p1936_p3 = pneg %p1935_p2 }
  0x3e   : > { %p1943_p11 = pnand %p1942_p8, %p1936_p3 }
  0x40   : > { %1946 = shalt.err (!%p1943_p11)
}
  0x41   : > { %s2055_s29 = smov 64   ;;  %s2056_s10 = smov 4  }
  0x42   : > { %1760 = dma.hbm_to_vmem [thread:$0]  (!%p2158_p12), %s2507_s4, 6144, %s2162_s14, [#allocation6], %s2055_s29, %s2055_s29, %s2056_s10  }
  0x43   : > { %p2517_p13 = scmp.ne.s32.totalorder %s2515_s9, 0 }
  0x44   : > { %p2518_p0 = scmp.eq.s32.totalorder (!%p2517_p13), %s2122_s25, 0 }
  0x45   : > { %259 = sbr.rel (%p2517_p13) target bundleno = 860 (0x35c), region = 40 }
  0x4c   : > { %2020 = dma.done.wait (%p2518_p0), [#allocation3], 1536   ;;  %p2519_p5 = pmov %p2518_p0 }
  0x4d   : > { %p2520_p6 = pmov %p2518_p0 }
  0x4e   : > { %2022 = vsyncadd (%p2519_p5), [#allocation3], 4294965760 }
  0x4f   : > { %2024 = dma.done.wait (%p2520_p6), [#allocation6], 6144   ;;  %p2521_p9 = pmov %p2518_p0 }
  0x50   : > { %s1529_s12 = sshll.u32 %s2122_s25, 1  ;;  %v2057_v0 = vmov 0   ;;  %v1824_v1 = vld [vmem:[#allocation2 + $0x4] ss:$24 sps:$4 sm:$0xff]   ;;  %v1828_v3 = vld [vmem:[#allocation2] ss:$24 sps:$4 sm:$0xff]   ;;  %v333_v14 = vlaneseq }
  0x51   : > { %2026 = vsyncadd (%p2521_p9), [#allocation6], 4294961152  ;;  %464 = vmatprep.mubr.bf16.mxu0 %v2057_v0  ;;  %507 = vmatprep.mubr.bf16.mxu1 %v2057_v0  ;;  %p304_p12 = scmp.lt.s32.totalorder %s1529_s12, 3  ;;  %v1826_v2 = vld [vmem:[#allocation2 + $0xc] ss:$24 sps:$4 sm:$0xff]   ;;  %vm428_vm0 = vcmask 261120  }
  0x52   : > { %432 = vmatprep.subr.bf16.mxu0 %v1824_v1  ;;  %v1829_v4 = vld [vmem:[#allocation2 + $0x8] ss:$24 sps:$4 sm:$0xff]   ;;  %475 = vmatprep.subr.bf16.mxu1 %v1826_v2  ;;  %v1830_v5 = vld [vmem:[#allocation2 + $0x34] ss:$24 sps:$4 sm:$0xff]   ;;  %v1835_v8 = vld [vmem:[#allocation2 + $0x38] ss:$24 sps:$4 sm:$0xff]  }
  0x53   : > { %s2529_s12 = smov (!%p304_p12, %s1529_s12), 3  ;;  %433 = vmatpush1.bf16.msra.mxu0 %v1828_v3  ;;  %476 = vmatpush1.bf16.msra.mxu1 %v1829_v4  ;;  %v1832_v6 = vld [vmem:[#allocation2 + $0x3c] ss:$24 sps:$4 sm:$0xff]   ;;  %v1834_v7 = vld [vmem:[#allocation2 + $0x30] ss:$24 sps:$4 sm:$0xff]   ;;  %v2232_v15 = vshrl.u32 %v333_v14, 7 }
  0x54   : > { %s1530_s9 = sshll.u32 %s2529_s12, 2  ;;  %434 = vmatprep.subr.bf16.mxu0 %v1830_v5  ;;  %477 = vmatprep.subr.bf16.mxu1 %v1832_v6  ;;  %v1839_v10 = vld [vmem:[#allocation2 + $0x14] ss:$24 sps:$4 sm:$0xff]   ;;  %v1837_v11 = vld [vmem:[#allocation2 + $0x10] ss:$24 sps:$4 sm:$0xff]   ;;  %v2241_v21 = vand.u32 127, %v333_v14 }
  0x55   : > { %s307_s17 = scalar_lea.vmem %s2503_s0, %s1530_s9  ;;  %v1842_v12 = vld [vmem:[#allocation2 + $0x44] ss:$24 sps:$4 sm:$0xff]   ;;  %v1840_v13 = vld [vmem:[#allocation2 + $0x40] ss:$24 sps:$4 sm:$0xff]   ;;  %v335_v16 = vsub.s32 0, %v2232_v15  ;;  %v343_v18 = vsub.s32 2, %v2232_v15 }
  0x56   : > { %v1836_v9 = vld [vmem:[%s307_s17] sm:$0xff]   ;;  %v339_v19 = vsub.s32 1, %v2232_v15  ;;  %v347_v28 = vsub.s32 3, %v2232_v15  ;;  %v351_v30 = vsub.s32 4, %v2232_v15  ;;  %v2246_v31 = vadd.s32 128, %v2241_v21  ;;  %s1532_s20 = sshll.u32 %s2529_s12, 3 }
  0x57   : > { %435 = vmatpush1.bf16.msra.mxu0 %v1834_v7  ;;  %478 = vmatpush1.bf16.msra.mxu1 %v1835_v8  ;;  %v331_v17 = vld [vmem:[%s2505_s2] sm:$0x3f]  ;;  %v355_v36 = vsub.s32 5, %v2232_v15  ;;  %v2250_v40 = vadd.s32 256, %v2241_v21  ;;  %vm2059_vm9 = vmmov 0   ;;  %s313_s11 = scalar_lea.vmem %s2506_s3, %s1532_s20  ;;  %s2425_s29 = sand.u32 1, %s2041_s22  }
  0x58   : > { %518 = vmatprep.subr.bf16.mxu0 %v1839_v10  ;;  %v336_v20 = vrot.slane %v331_v17, %v335_v16  ;;  %v344_v22 = vrot.slane %v331_v17, %v343_v18  ;;  %v340_v23 = vrot.slane %v331_v17, %v339_v19  ;;  %v348_v42 = vrot.slane %v331_v17, %v347_v28  ;;  %v1844_v10 = vld [vmem:[#allocation5 + $0x80] sm:$0xff]   ;;  %v1847_v16 = vld [vmem:[#allocation5 + $0x88] sm:$0xff]   ;;  %v1849_v18 = vld [vmem:[#allocation5 + $0x50] sm:$0xff]   ;;  %s1740_s10 = smul.u32 6, %s2425_s29  ;;  %s1364_s17 = scalar_lea.sflag [#allocation9], %s2425_s29 }
  0x59   : > { %v352_v43 = vrot.slane %v331_v17, %v351_v30  ;;  %v356_v47 = vrot.slane %v331_v17, %v355_v36  ;;  %v1848_v17 = vld [vmem:[#allocation5 + $0x8] sm:$0xff]   ;;  %v1850_v19 = vld [vmem:[#allocation5 + $0x90] sm:$0xff]   ;;  %s1741_s15 = smul.u32 96, %s2122_s25  ;;  %p2522_p1 = scmp.ne.s32.totalorder %s2513_s7, 0 }
  0x5a   : > { %1546 = vmatmul.mubr.msk.bf16.vlgmr.msra.gmra.mrb[0].mxu0 %vm428_vm0, %v1836_v9  ;;  %1547 = vmatmul.mubr.msk.bf16.vlgmr.msra.gmra.mrb[0].mxu1 %vm428_vm0, %v1836_v9  ;;  %v1858_v28 = vld [vmem:[#allocation5 + $0x68] sm:$0xff]   ;;  %s302_s13 = scalar_lea.vmem [#allocation8], %s1740_s10  ;;  %s2062_s19 = smov [#allocation8]  }
  0x5b   : > { %519 = vmatpush1.bf16.msra.mxu0 %v1837_v11  ;;  %550 = vmatprep.mubr.bf16.mxu0 %v2057_v0  ;;  %v1845_v11 = vld [vmem:[#allocation5] sm:$0xff]   ;;  %v1860_v30 = vld [vmem:[#allocation5 + $0x28] sm:$0xff]   ;;  %s1395_s12 = sshll.u32 %s302_s13, 4  ;;  %s2433_s16 = scalar_lea.hbm %s2509_s6, %s1741_s15  ;;  %s1396_s12 = int_to_ptr.vmem [resolvable:$true] %s1395_s12 }
  0x5c   : > { %520 = vmatprep.subr.bf16.mxu0 %v1842_v12  ;;  %v2058_v12 = vmov 0.0   ;;  %s1947_s18 = scalar_lea.vmem %s1396_s12, 96  ;;  %s1951_s20 = sshll.u32 %s2062_s19, 4  ;;  %s1952_s20 = int_to_ptr.vmem [resolvable:$false] %s1951_s20 }
  0x5d   : > { %p1948_p10 = scmp.ne.s32.totalorder %s1396_s12, %s1947_s18  ;;  %s1953_s26 = scalar_lea.vmem %s1952_s20, 192 }
  0x5e   : > { %p1954_p4 = scmp.lt.s32.totalorder %s1396_s12, %s1952_s20  ;;  %p1955_p7 = scmp.lt.s32.totalorder %s1953_s26, %s1947_s18 }
  0x5f   : > { %521 = vmatpush1.bf16.msra.mxu0 %v1840_v13  ;;  %v1846_v13 = vld [vmem:[#allocation5 + $0x48] sm:$0xff]   ;;  %p1949_p2 = pnand %p1948_p10, %p2522_p1 }
  0x60   : > { %1700 = vmatprep.subr.bf16.mxu0 %v2058_v12  ;;  %p1956_p8 = por %p1955_p7, %p1954_p4 }
  0x61   : > { %p1950_p3 = pneg %p1949_p2 }
  0x62   : > { %1548 = vmatmul.mubr.msk.bf16.vlgmr.msra.gmra.mrb[4].mxu0 %vm428_vm0, %v1836_v9  ;;  %v1843_v9 = vld [vmem:[#allocation5 + $0x40] sm:$0xff]  }
  0x63   : > { %1638 = vmatprep.subr.bf16.mxu1 %v1843_v9  ;;  %1701 = vmatpush3.bf16.msra.mxu0 %v1844_v10  ;;  %p1957_p11 = pnand %p1956_p8, %p1950_p3 }
  0x64   : > { %1639 = vmatpush3.bf16.msra.mxu1 %v1845_v11  ;;  %1702 = vmatprep.subr.bf16.mxu0 %v2058_v12 }
  0x65   : > { %1640 = vmatprep.subr.bf16.mxu1 %v1846_v13  ;;  %1716 = vmatprep.mubr.msk.bf16.mxu0 %vm2059_vm9, %v2058_v12  ;;  %v1884_v13 = vld [vmem:[#allocation5 + $0xe8] sm:$0xff]  }
  0x67   : > { %1703 = vmatpush3.bf16.msra.mxu0 %v1847_v16 }
  0x68   : > { %1641 = vmatpush3.bf16.msra.mxu1 %v1848_v17  ;;  %1704 = vmatprep.subr.bf16.mxu0 %v2058_v12 }
  0x69   : > { %1642 = vmatprep.subr.bf16.mxu1 %v1849_v18 }
  0x6b   : > { %1705 = vmatpush3.bf16.msra.mxu0 %v1850_v19 }
  0x6c   : > { %1706 = vmatprep.subr.bf16.mxu0 %v2058_v12 }
 0x12d   : > { %v466_v24 = vpop.f32.mrb[0].mxu0  ;;  %v509_v25 = vpop.f32.mrb[0].mxu1 }
 0x12e   : > { %v467_v26 = vadd.f32 %v466_v24, %v336_v20  ;;  %v468_v27 = vpop.f32.mrb[1].mxu0  ;;  %v511_v29 = vpop.f32.mrb[1].mxu1  ;;  %v510_v32 = vadd.f32 %v509_v25, %v344_v22  ;;  %v1854_v24 = vld [vmem:[#allocation5 + $0x18] sm:$0xff]   ;;  %v1855_v25 = vld [vmem:[#allocation5 + $0x60] sm:$0xff]  }
 0x12f   : > { %v469_v33 = vadd.f32 %v468_v27, %v340_v23  ;;  %v470_v34 = vpop.f32.mrb[2].mxu0  ;;  %v513_v35 = vpop.f32.mrb[2].mxu1  ;;  %v512_v53 = vadd.f32 %v511_v29, %v348_v42  ;;  %v1857_v27 = vld [vmem:[#allocation5 + $0x20] sm:$0xff]   ;;  %v1859_v29 = vld [vmem:[#allocation5 + $0xa8] sm:$0xff]  }
 0x130   : > { %v471_v37 = vadd.f32 %v470_v34, %v336_v20  ;;  %v472_v38 = vpop.f32.mrb[3].mxu0  ;;  %v515_v39 = vpop.f32.mrb[3].mxu1  ;;  %v514_v46 = vadd.f32 %v513_v35, %v344_v22  ;;  %v1851_v20 = vld [vmem:[#allocation5 + $0x10] sm:$0xff]   ;;  %v1852_v22 = vld [vmem:[#allocation5 + $0x58] sm:$0xff]  }
 0x131   : > { %vm566_vm1 = vcmp.ge.f32.partialorder %v467_v26, %v469_v33  ;;  %v473_v41 = vadd.f32 %v472_v38, %v340_v23  ;;  %v516_v60 = vadd.f32 %v515_v39, %v348_v42  ;;  %v1853_v23 = vld [vmem:[#allocation5 + $0x98] sm:$0xff]   ;;  %1643 = vmatpush3.bf16.msra.mxu1 %v1851_v20  ;;  %v1863_v34 = vld [vmem:[#allocation5 + $0x30] sm:$0xff]  }
 0x132   : > { %v567_v44 = vsel %vm566_vm1, %v467_v26, %v469_v33  ;;  %v568_v45 = vsel %vm566_vm1, %v2241_v21, %v2246_v31  ;;  %1644 = vmatprep.subr.bf16.mxu1 %v1852_v22  ;;  %1707 = vmatpush3.bf16.msra.mxu0 %v1853_v23  ;;  %v1856_v26 = vld [vmem:[#allocation5 + $0xa0] sm:$0xff]   ;;  %v1862_v33 = vld [vmem:[#allocation5 + $0xb0] sm:$0xff]   ;;  %v1865_v38 = vld [vmem:[#allocation5 + $0xb8] sm:$0xff]  }
 0x133   : > { %vm578_vm2 = vcmp.ge.f32.partialorder %v471_v37, %v473_v41  ;;  %vm570_vm3 = vcmp.ge.f32.partialorder %v567_v44, %v510_v32  ;;  %1708 = vmatprep.subr.bf16.mxu0 %v2058_v12  ;;  %v1866_v39 = vld [vmem:[#allocation5 + $0x38] sm:$0xff]   ;;  %v1885_v20 = vld [vmem:[#allocation5 + $0x130] sm:$0xff]  }
 0x134   : > { %v571_v48 = vsel %vm570_vm3, %v567_v44, %v510_v32  ;;  %v579_v49 = vsel %vm578_vm2, %v471_v37, %v473_v41  ;;  %v2255_v50 = vsel %vm570_vm3, %v568_v45, %v2250_v40  ;;  %v580_v51 = vsel %vm578_vm2, %v2241_v21, %v2246_v31  ;;  %v1861_v32 = vld [vmem:[#allocation5 + $0x70] sm:$0xff]   ;;  %v1864_v37 = vld [vmem:[#allocation5 + $0x78] sm:$0xff]   ;;  %v561_v44 = vld [vmem:[%s313_s11] sm:$0xff] }
 0x135   : > { %v552_v52 = vpop.f32.mrb[4].mxu0  ;;  %573 = vmax.index.xlane.f32.xlu0 %v571_v48  ;;  %vm581_vm4 = vcmp.ge.f32.partialorder %v579_v49, %v514_v46  ;;  %1645 = vmatpush3.bf16.msra.mxu1 %v1854_v24  ;;  %v562_v45 = vld [vmem:[%s313_s11 + $0x8] sm:$0xff]  ;;  %v1869_v48 = vld [vmem:[#allocation5 + $0xc0] sm:$0xff]  }
 0x136   : > { %v553_v54 = vadd.f32 %v552_v52, %v352_v43  ;;  %v554_v55 = vpop.f32.mrb[5].mxu0  ;;  %v582_v56 = vsel %vm581_vm4, %v579_v49, %v514_v46  ;;  %v2260_v57 = vsel %vm581_vm4, %v580_v51, %v2250_v40  ;;  %1646 = vmatprep.subr.bf16.mxu1 %v1855_v25  ;;  %1709 = vmatpush3.bf16.msra.mxu0 %v1856_v26  ;;  %v2060_v49 = vmov 1.0|1.0   ;;  %v1871_v51 = vld [vmem:[#allocation5 + $0x148] sm:$0xff]  }
 0x137   : > { %v555_v58 = vadd.f32 %v554_v55, %v356_v47  ;;  %v556_v59 = vpop.f32.mrb[6].mxu0  ;;  %1710 = vmatprep.subr.bf16.mxu0 %v2058_v12  ;;  %v1872_v52 = vld [vmem:[#allocation5 + $0xc8] sm:$0xff]   ;;  %v1875_v55 = vld [vmem:[#allocation5 + $0xd0] sm:$0xff]  }
 0x138   : > { %vm969_vm5 = vcmp.ge.f32.partialorder %v512_v53, %v553_v54  ;;  %v557_v61 = vadd.f32 %v556_v59, %v352_v43  ;;  %v558_v62 = vpop.f32.mrb[7].mxu0  ;;  %v1867_v43 = vld [vmem:[#allocation5 + $0x100] sm:$0xff]   ;;  %v1878_v59 = vld [vmem:[#allocation5 + $0xd8] sm:$0xff]  }
 0x139   : > { %v559_v63 = vadd.f32 %v558_v62, %v356_v47  ;;  %584 = vmax.index.xlane.f32.xlu0 %v582_v56  ;;  %v970_v1 = vsel %vm969_vm5, %v512_v53, %v553_v54  ;;  %v971_v2 = vsel %vm969_vm5, %v2241_v21, %v2246_v31  ;;  %1647 = vmatpush3.bf16.msra.mxu1 %v1857_v27  ;;  %v1873_v53 = vld [vmem:[#allocation5 + $0x110] sm:$0xff]   ;;  %v1880_v62 = vld [vmem:[#allocation5 + $0x160] sm:$0xff]  }
 0x13a   : > { %vm980_vm6 = vcmp.ge.f32.partialorder %v516_v60, %v557_v61  ;;  %vm972_vm7 = vcmp.ge.f32.partialorder %v970_v1, %v555_v58  ;;  %1648 = vmatprep.subr.bf16.mxu1 %v1858_v28  ;;  %1711 = vmatpush3.bf16.msra.mxu0 %v1859_v29  ;;  %v1874_v54 = vld [vmem:[#allocation5 + $0x150] sm:$0xff]  }
 0x13b   : > { %v981_v3 = vsel %vm980_vm6, %v516_v60, %v557_v61  ;;  %v973_v4 = vsel %vm972_vm7, %v970_v1, %v555_v58  ;;  %v2265_v5 = vsel %vm972_vm7, %v971_v2, %v2250_v40  ;;  %v982_v6 = vsel %vm980_vm6, %v2241_v21, %v2246_v31  ;;  %1712 = vmatprep.subr.bf16.mxu0 %v2058_v12  ;;  %v1877_v58 = vld [vmem:[#allocation5 + $0x158] sm:$0xff]   ;;  %v1879_v61 = vld [vmem:[#allocation5 + $0x120] sm:$0xff]   ;;  %v1882_v1 = vld [vmem:[#allocation5 + $0x128] sm:$0xff]  }
 0x13c   : > { %vm983_vm8 = vcmp.ge.f32.partialorder %v981_v3, %v559_v63  ;;  %975 = vmax.index.xlane.f32.xlu1 %v973_v4  ;;  %v1886_v27 = vld [vmem:[#allocation5 + $0x170] sm:$0xff]  }
 0x13d   : > { %v984_v7 = vsel %vm983_vm8, %v981_v3, %v559_v63  ;;  %v2270_v8 = vsel %vm983_vm8, %v982_v6, %v2250_v40  ;;  %1649 = vmatpush3.bf16.msra.mxu1 %v1860_v30  ;;  %v1881_v63 = vld [vmem:[#allocation5 + $0xe0] sm:$0xff]   ;;  %v1883_v3 = vld [vmem:[#allocation5 + $0x168] sm:$0xff]  }
 0x13e   : > { %1650 = vmatprep.subr.bf16.mxu1 %v1861_v32  ;;  %1713 = vmatpush3.bf16.msra.mxu0 %v1862_v33 }
 0x13f   : > { %1714 = vmatprep.subr.bf16.mxu0 %v2058_v12 }
 0x140   : > { %986 = vmax.index.xlane.f32.xlu1 %v984_v7 }
 0x141   : > { %1651 = vmatpush3.bf16.msra.mxu1 %v1863_v34 }
 0x142   : > { %1652 = vmatprep.subr.bf16.mxu1 %v1864_v37  ;;  %1715 = vmatpush3.bf16.msra.mxu0 %v1865_v38 }
 0x143   : > { %1720 = vmatprep.subr.bf16.mxu0 %v2058_v12 }
 0x145   : > { %1653 = vmatpush3.bf16.msra.mxu1 %v1866_v39 }
 0x146   : > { %1669 = vmatprep.subr.bf16.mxu1 %v1867_v43 }
 0x1c2   : > { %v574_v35 = vpop.xlane.xlu0 %573 }
 0x1c3   : > { %1818 = vset.pattern.permute.xlu0 %v574_v35 }
 0x1c6   : > { %v585_v36 = vpop.xlane.xlu0 %584 }
 0x1c7   : > { %576 = vperm.xlu0 %1818, %v2255_v50   ;;  %1819 = vset.pattern.permute.xlu1 %v585_v36  ;;  %v1870_v50 = vld [vmem:[#allocation5 + $0x108] sm:$0xff]   ;;  %v1887_v36 = vld [vmem:[#allocation5 + $0xf0] sm:$0xff]  }
 0x1c9   : > { %v976_v41 = vpop.xlane.xlu1 %975 }
 0x1cb   : > { %587 = vperm.xlu1 %1819, %v2260_v57   ;;  %v1876_v57 = vld [vmem:[#allocation5 + $0x118] sm:$0xff]  }
 0x1cd   : > { %v987_v42 = vpop.xlane.xlu1 %986 }
 0x1ce   : > { %1823 = vset.pattern.permute.xlu0 %v987_v42 }
 0x1cf   : > { %1820 = vset.pattern.permute.xlu1 %v976_v41 }
 0x1d3   : > { %978 = vperm.xlu1 %1820, %v2265_v5  }
 0x1d7   : > { %1821 = vset.pattern.permute.xlu1 %v987_v42  ;;  %v1888_v42 = vld [vmem:[#allocation5 + $0x138] sm:$0xff]  }
 0x1db   : > { %989 = vperm.xlu1 %1821, %v2270_v8  }
 0x1df   : > { %1822 = vset.pattern.permute.xlu1 %v2057_v0  ;;  %v1868_v0 = vld [vmem:[#allocation5 + $0x140] sm:$0xff]  }
 0x1e0   : > { %618 = vperm.xlu1 %1822, %v561_v44  }
 0x1e4   : > { %623 = vperm.xlu1 %1822, %v562_v45   ;;  %v1889_v45 = vld [vmem:[#allocation5 + $0x178] sm:$0xff]  }
 0x246   : > { %v2292_v46 = vpop.permute.xlu0 %576 }
 0x247   : > { %vm589_vm10 = vcmp.eq.s32.totalorder %v2241_v21, %v2292_v46  ;;  %vm591_vm14 = vcmp.eq.s32.totalorder %v2250_v40, %v2292_v46  ;;  %vm590_vm0 = vcmp.eq.s32.totalorder %v2246_v31, %v2292_v46 }
 0x248   : > { %v1549_v4 = vsel %vm589_vm10, 1.0, %v2058_v12  ;;  %v1550_v5 = vsel %vm590_vm0, 1.0, %v2058_v12  ;;  %v1551_v6 = vsel %vm591_vm14, 1.0, %v2058_v12 }
 0x24a   : > { %v2294_v47 = vpop.permute.xlu1 %587 }
 0x24b   : > { %vm592_vm11 = vcmp.eq.s32.totalorder %v2241_v21, %v2294_v47  ;;  %vm593_vm12 = vcmp.eq.s32.totalorder %v2246_v31, %v2294_v47  ;;  %vm594_vm13 = vcmp.eq.s32.totalorder %v2250_v40, %v2294_v47 }
 0x24c   : > { %vm1581_vm15 = vmpackc.low %vm592_vm11, %vm589_vm10  ;;  %v1552_v7 = vsel %vm592_vm11, 1.0, %v2058_v12  ;;  %v1553_v8 = vsel %vm593_vm12, 1.0, %v2058_v12  ;;  %v1554_v9 = vsel %vm594_vm13, 1.0, %v2058_v12 }
 0x24d   : > { %vm1583_vm1 = vmpackc.low %vm594_vm13, %vm591_vm14 }
 0x24e   : > { %vm1579_vm2 = vmpackc.low %vm593_vm12, %vm590_vm0  ;;  %1717 = vmatmul.mubr.msk.bf16.vlgmr.msra.gmra.mrb[8].mxu0 %vm1583_vm1, %v2060_v49  ;;  %vm682_vm12 = vcmp.lt.s32.totalorder %v333_v14, 384 }
 0x24f   : > { %1580 = vmatprep.mubr.msk.bf16.mxu1 %vm1579_vm2, %v2060_v49  ;;  %1721 = vmatpush3.bf16.msra.mxu0 %v1868_v0 }
 0x250   : > { %1582 = vmatmul.mubr.msk.bf16.vlgmr.msra.gmra.mrb[4].mxu1 %vm1581_vm15, %v2060_v49  ;;  %1722 = vmatprep.subr.bf16.mxu0 %v2058_v12 }
 0x251   : > { %1670 = vmatpush3.bf16.msra.mxu1 %v1869_v48  ;;  %1736 = vmatprep.mubr.msk.bf16.mxu0 %vm2059_vm9, %v2058_v12 }
 0x252   : > { %1671 = vmatprep.subr.bf16.mxu1 %v1870_v50  ;;  %v2333_v56 = vpop.permute.xlu1 %978  ;;  %v2061_v50 = vmov 1966171168  }
 0x253   : > { %1723 = vmatpush3.bf16.msra.mxu0 %v1871_v51  ;;  %vm992_vm4 = vcmp.eq.s32.totalorder %v2246_v31, %v2333_v56  ;;  %vm991_vm5 = vcmp.eq.s32.totalorder %v2241_v21, %v2333_v56  ;;  %vm993_vm7 = vcmp.eq.s32.totalorder %v2250_v40, %v2333_v56  ;;  %v658_v51 = vunpack.c.l.s4 %v2061_v50 }
 0x254   : > { %1724 = vmatprep.subr.bf16.mxu0 %v2058_v12  ;;  %v1587_v10 = vsel %vm991_vm5, 1.0, %v2058_v12  ;;  %v1588_v11 = vsel %vm992_vm4, 1.0, %v2058_v12  ;;  %v1589_v16 = vsel %vm993_vm7, 1.0, %v2058_v12 }
 0x255   : > { %1672 = vmatpush3.bf16.msra.mxu1 %v1872_v52 }
 0x256   : > { %1673 = vmatprep.subr.bf16.mxu1 %v1873_v53 }
 0x257   : > { %1725 = vmatpush3.bf16.msra.mxu0 %v1874_v54  ;;  %v1890_v54 = vld [vmem:[#allocation5 + $0xf8] sm:$0xff]  }
 0x258   : > { %1726 = vmatprep.subr.bf16.mxu0 %v2058_v12 }
 0x259   : > { %1674 = vmatpush3.bf16.msra.mxu1 %v1875_v55 }
 0x25a   : > { %1675 = vmatprep.subr.bf16.mxu1 %v1876_v57  ;;  %v2336_v60 = vpop.permute.xlu1 %989 }
 0x25b   : > { %1727 = vmatpush3.bf16.msra.mxu0 %v1877_v58  ;;  %vm995_vm3 = vcmp.eq.s32.totalorder %v2246_v31, %v2336_v60  ;;  %vm994_vm8 = vcmp.eq.s32.totalorder %v2241_v21, %v2336_v60  ;;  %vm996_vm9 = vcmp.eq.s32.totalorder %v2250_v40, %v2336_v60 }
 0x25c   : > { %1728 = vmatprep.subr.bf16.mxu0 %v2058_v12  ;;  %vm1617_vm6 = vmpackc.low %vm995_vm3, %vm992_vm4  ;;  %v1590_v17 = vsel %vm994_vm8, 1.0, %v2058_v12  ;;  %v1591_v18 = vsel %vm995_vm3, 1.0, %v2058_v12  ;;  %v1592_v19 = vsel %vm996_vm9, 1.0, %v2058_v12 }
 0x25d   : > { %1676 = vmatpush3.bf16.msra.mxu1 %v1878_v59  ;;  %1618 = vmatprep.mubr.msk.bf16.mxu1 %vm1617_vm6, %v2060_v49  ;;  %vm1621_vm10 = vmpackc.low %vm996_vm9, %vm993_vm7 }
 0x25e   : > { %1677 = vmatprep.subr.bf16.mxu1 %v1879_v61  ;;  %vm1619_vm11 = vmpackc.low %vm994_vm8, %vm991_vm5 }
 0x25f   : > { %1729 = vmatpush3.bf16.msra.mxu0 %v1880_v62  ;;  %v619_v2 = vpop.permute.xlu1 %618 }
 0x260   : > { %1730 = vmatprep.subr.bf16.mxu0 %v2058_v12  ;;  %v626_v22 = vmul.f32 %v1549_v4, %v619_v2  ;;  %v627_v23 = vmul.f32 %v1550_v5, %v619_v2  ;;  %v628_v24 = vmul.f32 %v1551_v6, %v619_v2  ;;  %v1018_v25 = vmul.f32 %v1587_v10, %v619_v2 }
 0x261   : > { %1678 = vmatpush3.bf16.msra.mxu1 %v1881_v63  ;;  %v1019_v31 = vmul.f32 %v1588_v11, %v619_v2  ;;  %v1020_v33 = vmul.f32 %v1589_v16, %v619_v2 }
 0x262   : > { %1679 = vmatprep.subr.bf16.mxu1 %v1882_v1 }
 0x263   : > { %1731 = vmatpush3.bf16.msra.mxu0 %v1883_v3  ;;  %v624_v26 = vpop.permute.xlu1 %623 }
 0x264   : > { %v629_v28 = vmul.f32 %v1552_v7, %v624_v26  ;;  %v630_v29 = vmul.f32 %v1553_v8, %v624_v26  ;;  %v631_v30 = vmul.f32 %v1554_v9, %v624_v26  ;;  %v1021_v32 = vmul.f32 %v1590_v17, %v624_v26  ;;  %1732 = vmatprep.subr.bf16.mxu0 %v2058_v12 }
 0x265   : > { %1680 = vmatpush3.bf16.msra.mxu1 %v1884_v13  ;;  %v1022_v34 = vmul.f32 %v1591_v18, %v624_v26  ;;  %v1023_v35 = vmul.f32 %v1592_v19, %v624_v26 }
 0x266   : > { %v632_v37 = vadd.f32 %v629_v28, %v626_v22  ;;  %v639_v38 = vadd.f32 %v630_v29, %v627_v23  ;;  %v646_v39 = vadd.f32 %v631_v30, %v628_v24  ;;  %v1024_v41 = vadd.f32 %v1021_v32, %v1018_v25  ;;  %1681 = vmatprep.subr.bf16.mxu1 %v1885_v20 }
 0x267   : > { %v1031_v43 = vadd.f32 %v1022_v34, %v1019_v31  ;;  %v1038_v44 = vadd.f32 %v1023_v35, %v1020_v33  ;;  %1733 = vmatpush3.bf16.msra.mxu0 %v1886_v27 }
 0x268   : > { %v633_v46 = vrot.slane %v632_v37, 4  ;;  %v640_v47 = vrot.slane %v639_v38, 4  ;;  %v647_v0 = vrot.slane %v646_v39, 4  ;;  %v1025_v48 = vrot.slane %v1024_v41, 4  ;;  %1734 = vmatprep.subr.bf16.mxu0 %v2058_v12 }
 0x269   : > { %v1032_v52 = vrot.slane %v1031_v43, 4  ;;  %v1039_v53 = vrot.slane %v1038_v44, 4  ;;  %1682 = vmatpush3.bf16.msra.mxu1 %v1887_v36  ;;  %v659_v12 = vunpack.c.0.s8 %v658_v51 }
 0x26a   : > { %v634_v55 = vadd.f32 %v633_v46, %v632_v37  ;;  %v641_v57 = vadd.f32 %v640_v47, %v639_v38  ;;  %v648_v58 = vadd.f32 %v647_v0, %v646_v39  ;;  %v1026_v59 = vadd.f32 %v1025_v48, %v1024_v41  ;;  %1683 = vmatprep.subr.bf16.mxu1 %v1888_v42 }
 0x26b   : > { %v1033_v61 = vadd.f32 %v1032_v52, %v1031_v43  ;;  %v1040_v62 = vadd.f32 %v1039_v53, %v1038_v44  ;;  %1735 = vmatpush3.bf16.msra.mxu0 %v1889_v45  ;;  %v662_v18 = vsub.s32 %v659_v12, %v2232_v15 }
 0x26c   : > { %v635_v63 = vrot.slane %v634_v55, 2  ;;  %v642_v1 = vrot.slane %v641_v57, 2  ;;  %v649_v2 = vrot.slane %v648_v58, 2  ;;  %v1027_v3 = vrot.slane %v1026_v59, 2 }
 0x26d   : > { %v1034_v4 = vrot.slane %v1033_v61, 2  ;;  %v1041_v5 = vrot.slane %v1040_v62, 2  ;;  %1684 = vmatpush3.bf16.msra.mxu1 %v1890_v54 }
 0x26e   : > { %v636_v6 = vadd.f32 %v635_v63, %v634_v55  ;;  %v643_v7 = vadd.f32 %v642_v1, %v641_v57  ;;  %v650_v8 = vadd.f32 %v649_v2, %v648_v58  ;;  %v1028_v9 = vadd.f32 %v1027_v3, %v1026_v59  ;;  %1737 = vmatmul.mubr.msk.bf16.vlgmr.msra.gmra.mrb[12].mxu0 %vm1621_vm10, %v2060_v49 }
 0x26f   : > { %v1035_v40 = vadd.f32 %v1034_v4, %v1033_v61  ;;  %v1042_v10 = vadd.f32 %v1041_v5, %v1040_v62 }
 0x270   : > { %v637_v11 = vrot.slane %v636_v6, 1  ;;  %v644_v13 = vrot.slane %v643_v7, 1  ;;  %v651_v16 = vrot.slane %v650_v8, 1  ;;  %v1029_v17 = vrot.slane %v1028_v9, 1  ;;  %1620 = vmatmul.mubr.msk.bf16.vlgmr.msra.gmra.mrb[8].mxu1 %vm1619_vm11, %v2060_v49 }
 0x271   : > { %v1036_v19 = vrot.slane %v1035_v40, 1  ;;  %v1043_v20 = vrot.slane %v1042_v10, 1 }
 0x272   : > { %v638_v22 = vadd.f32 %v637_v11, %v636_v6  ;;  %v645_v23 = vadd.f32 %v644_v13, %v643_v7  ;;  %v652_v56 = vadd.f32 %v651_v16, %v650_v8  ;;  %v1030_v24 = vadd.f32 %v1029_v17, %v1028_v9 }
 0x273   : > { %v1037_v21 = vadd.f32 %v1036_v19, %v1035_v40  ;;  %v1044_v60 = vadd.f32 %v1043_v20, %v1042_v10 }
 0x274   : > { %v656_v25 = vcombine.low %v638_v22, %v645_v23  ;;  %v670_v27 = vrot.slane %v652_v56, %v662_v18 }
 0x275   : > { %v1048_v26 = vcombine.low %v1030_v24, %v1037_v21  ;;  %v1062_v28 = vrot.slane %v1044_v60, %v662_v18 }
 0x276   : > { %v663_v49 = vrot.slane %v656_v25, %v662_v18 }
 0x277   : > { %v1055_v15 = vrot.slane %v1048_v26, %v662_v18 }
 0x278   : > { %v671_v29 = vcombine.low %v663_v49, %v670_v27 }
 0x279   : > { %v1063_v30 = vcombine.low %v1055_v15, %v1062_v28 }
 0x27a   : > { %v678_v32 = vrot.slane %v671_v29, %v662_v18 }
 0x27b   : > { %v1070_v31 = vrot.slane %v1063_v30, %v662_v18 }
 0x27c   : > { %684 = vst.msk [vmem:[%s302_s13] sm:$0x7] %vm682_vm12, %v678_v32 }
 0x27d   : > { %1072 = vst.msk [vmem:[%s302_s13 + $0x3] sm:$0x7] %vm682_vm12, %v1070_v31 }
 0x27e   : > { %1960 = shalt.err (!%p1957_p11)
}
 0x27f   : > { %s1961_s28 = scalar_lea.hbm %s2433_s16, 96  ;;  %s1965_s13 = scalar_lea.hbm %s2509_s6, 192 }
 0x280   : > { %p1962_p13 = scmp.ne.s32.totalorder %s2433_s16, %s1961_s28  ;;  %p1966_p6 = scmp.lt.u32.totalorder %s2433_s16, %s2509_s6 }
 0x281   : > { %p1967_p9 = scmp.lt.u32.totalorder %s1965_s13, %s1961_s28  ;;  %p1969_p10 = scmp.lt.u32.totalorder %s1961_s28, %s2433_s16 }
 0x282   : > { %p1963_p0 = pnand %p1962_p13, %p2522_p1 }
 0x283   : > { %p1968_p12 = por %p1967_p9, %p1966_p6 }
 0x284   : > { %p1964_p5 = pneg %p1963_p0 }
 0x285   : > { %p1970_p2 = por %p1969_p10, %p1968_p12 }
 0x287   : > { %p1971_p3 = pnand %p1970_p2, %p1964_p5 }
 0x289   : > { %1974 = shalt.err (!%p1971_p3)
}
 0x28a   : > { %1751 = dma.vmem_to_hbm [thread:$0]  (%p2522_p1), %s1396_s12, 96, %s2433_s16, %s1364_s17  }
 0x28b   : > { %s1528_s14 = sshll.u32 %s2425_s29, 4  ;;  %s1637_s16 = sshll.u32 %s2122_s25, 8 }
 0x28c   : > { %s295_s18 = scalar_lea.vmem [#allocation7], %s1528_s14  ;;  %s2460_s20 = scalar_lea.hbm %s2508_s5, %s1637_s16 }
 0x28d   : > { %s1378_s12 = sshll.u32 %s295_s18, 4  ;;  %s1359_s26 = scalar_lea.sflag [#allocation4], %s2425_s29  ;;  %s2455_s12 = int_to_ptr.vmem [resolvable:$true] %s1378_s12 }
 0x28e   : > { %s1975_s28 = scalar_lea.vmem %s2455_s12, 256  ;;  %s2063_s25 = smov [#allocation7]  }
 0x28f   : > { %p1976_p4 = scmp.ne.s32.totalorder %s2455_s12, %s1975_s28  ;;  %s1979_s11 = sshll.u32 %s2063_s25, 4  ;;  %s1980_s11 = int_to_ptr.vmem [resolvable:$false] %s1979_s11 }
 0x290   : > { %s1981_s10 = scalar_lea.vmem %s1980_s11, 512  ;;  %p1982_p11 = scmp.lt.s32.totalorder %s2455_s12, %s1980_s11 }
 0x291   : > { %p1977_p7 = pnand %p1976_p4, %p2522_p1  ;;  %p1983_p13 = scmp.lt.s32.totalorder %s1981_s10, %s1975_s28 }
 0x293   : > { %p1978_p8 = pneg %p1977_p7  ;;  %p1984_p0 = por %p1983_p13, %p1982_p11 }
 0x295   : > { %p1985_p5 = pnand %p1984_p0, %p1978_p8 }
 0x321   : > { %v952_v14 = vpop.f32.mrb[8].mxu0 }
 0x322   : > { %v1718_v33 = vpop.f32.mrb[9].mxu0 }
 0x323   : > { %v1654_v34 = vpop.f32.mrb[4].mxu1  ;;  %v955_v35 = vpop.f32.mrb[10].mxu0 }
 0x324   : > { %v1655_v36 = vpop.f32.mrb[5].mxu1  ;;  %v1719_v37 = vpop.f32.mrb[11].mxu0 }
 0x325   : > { %v1656_v38 = vadd.f32 %v1655_v36, %v1654_v34  ;;  %v1657_v39 = vpop.f32.mrb[6].mxu1 }
 0x326   : > { %v1658_v41 = vpop.f32.mrb[7].mxu1 }
 0x327   : > { %v953_v42 = vadd.f32 %v1656_v38, %v952_v14  ;;  %v1659_v43 = vadd.f32 %v1658_v41, %v1657_v39 }
 0x329   : > { %v1632_v44 = vpack.c.bf16 %v953_v42, %v953_v42  ;;  %v956_v45 = vadd.f32 %v1659_v43, %v955_v35 }
 0x32b   : > { %967 = vst [vmem:[%s295_s18] sm:$0xf] %v1632_v44  ;;  %v1633_v46 = vpack.c.bf16 %v956_v45, %v956_v45 }
 0x32d   : > { %968 = vst [vmem:[%s295_s18 + $0x8] sm:$0xf] %v1633_v46 }
 0x341   : > { %v1341_v47 = vpop.f32.mrb[12].mxu0 }
 0x342   : > { %v1738_v0 = vpop.f32.mrb[13].mxu0 }
 0x343   : > { %v1685_v48 = vpop.f32.mrb[8].mxu1  ;;  %v1344_v50 = vpop.f32.mrb[14].mxu0 }
 0x344   : > { %v1686_v51 = vpop.f32.mrb[9].mxu1  ;;  %v1739_v52 = vpop.f32.mrb[15].mxu0 }
 0x345   : > { %v1687_v53 = vadd.f32 %v1686_v51, %v1685_v48  ;;  %v1688_v54 = vpop.f32.mrb[10].mxu1 }
 0x346   : > { %v1689_v55 = vpop.f32.mrb[11].mxu1 }
 0x347   : > { %v1342_v57 = vadd.f32 %v1687_v53, %v1341_v47  ;;  %v1690_v58 = vadd.f32 %v1689_v55, %v1688_v54 }
 0x349   : > { %v1634_v59 = vpack.c.bf16 %v1342_v57, %v1342_v57  ;;  %v1345_v61 = vadd.f32 %v1690_v58, %v1344_v50 }
 0x34b   : > { %1356 = vst [vmem:[%s295_s18 + $0x4] sm:$0xf] %v1634_v59  ;;  %v1635_v62 = vpack.c.bf16 %v1345_v61, %v1345_v61 }
 0x34d   : > { %1357 = vst [vmem:[%s295_s18 + $0xc] sm:$0xf] %v1635_v62 }
 0x34e   : > { %1988 = shalt.err (!%p1985_p5)
}
 0x34f   : > { %s1989_s13 = scalar_lea.hbm %s2460_s20, 256  ;;  %s1993_s14 = scalar_lea.hbm %s2508_s5, 512 }
 0x350   : > { %p1990_p6 = scmp.ne.s32.totalorder %s2460_s20, %s1989_s13  ;;  %p1994_p10 = scmp.lt.u32.totalorder %s2460_s20, %s2508_s5 }
 0x351   : > { %p1995_p2 = scmp.lt.u32.totalorder %s1993_s14, %s1989_s13  ;;  %p1997_p4 = scmp.lt.u32.totalorder %s1989_s13, %s2460_s20 }
 0x352   : > { %p1991_p9 = pnand %p1990_p6, %p2522_p1 }
 0x353   : > { %p1996_p3 = por %p1995_p2, %p1994_p10 }
 0x354   : > { %p1992_p12 = pneg %p1991_p9 }
 0x355   : > { %p1998_p7 = por %p1997_p4, %p1996_p3 }
 0x357   : > { %p1999_p8 = pnand %p1998_p7, %p1992_p12 }
 0x359   : > { %2002 = shalt.err (!%p1999_p8)
}
 0x35a   : > { %s2064_s17 = smov 128   ;;  %s2065_s19 = smov 8  }
 0x35b   : > { %1750 = dma.vmem_to_hbm [thread:$0]  (%p2522_p1), %s2455_s12, 256, %s2460_s20, %s1359_s26, %s2064_s17, %s2064_s17, %s2065_s19  }
 0x35c PF: > { %p1772_p11 = scmp.ge.s32.totalorder %s2049_s24, 2  ;;  %s1407_s28 = sand.u32 1, %s2037_s21  }
 0x35d   : > { %p2523_p13 = scmp.ne.s32.totalorder %s2514_s8, 0  ;;  %s1408_s25 = scalar_lea.sflag [#allocation4], %s1407_s28 }
 0x35f   : > { %p1762_p0 = pnand %p1772_p11, %p2523_p13 }
 0x361   : > { %2028 = dma.done.wait (!%p1762_p0), %s1408_s25, 256  }
 0x362   : > { %2030 = vsyncadd (!%p1762_p0), %s1408_s25, 4294967040  ;;  %s1417_s11 = scalar_lea.sflag [#allocation9], %s1407_s28 }
 0x363   : > { %2032 = dma.done.wait (!%p1762_p0), %s1417_s11, 96  }
 0x364   : > { %2034 = vsyncadd (!%p1762_p0), %s1417_s11, 4294967200  ;;  %p22_p1 = scmp.ge.s32.totalorder %s2126_s27, 4   ;;  %s2524_s21 = smov %s2041_s22 }
 0x365   : > { %s2525_s22 = smov %s2045_s23  ;;  %s2526_s23 = smov %s2137_s30 }
 0x366   : > { %s2527_s24 = smov %s2126_s27  ;;  %24 = sbr.rel (!%p22_p1) target bundleno = 7 (0x7), region = 105 }
 0x36d   :  { %1422 = vsyncpa [#allocation3], 1 }
 0x36e   :  { %1424 = vsyncpa [#allocation3 + $0x1], 1 }
 0x36f   :  { %1425 = vsyncpa [#allocation6], 1 }
 0x370   :  { %1426 = vsyncpa [#allocation4], 1 }
 0x371   :  { %1428 = vsyncpa [#allocation4 + $0x1], 1 }
 0x372   :  { %1429 = vsyncpa [#allocation9], 1 }
 0x373   :  { %1431 = vsyncpa [#allocation9 + $0x1], 1 }

</bundles_post_ra>
